<compile_context>
chip_gen: v6e
topology: v6e:2x2x1
jax: 0.10.0
libtpu: 0.0.40
codegen_flags: <defaults>
</compile_context>

<pallas_src>
import functools

import jax
import jax.numpy as jnp
from jax import lax
from jax.experimental import pallas as pl
from jax.experimental.pallas import tpu as pltpu


def _round_up(x, m):
    return ((x + m - 1) // m) * m


def _vae_conv_kernel(x_ref, w_ref, b_ref, eps_ref, z_ref, mu_ref, lv_ref, *,
                     C_out_p, K, L):
    # x_ref   : (TB, C_in, L + K - 1)   reflect-padded input block
    # w_ref   : (K, 2*C_out_p, C_in)    conv weight, tap-major (resident)
    # b_ref   : (2*C_out_p, 1)          conv bias (resident)
    # eps_ref : (TB, C_out_p, L)        pre-sampled N(0,1) noise block
    # outputs : (TB, C_out_p, L) each, PyTorch layout -> no post-kernel copies.
    TB = x_ref.shape[0]
    x = x_ref[...]
    w = w_ref[...]

    if TB == 1:
        # 2-D fast path: one (2*C_out_p, C_in) @ (C_in, L) MXU dot per tap,
        # accumulated in f32 registers; bias fused into the same accumulator.
        xb = x[0]                                            # (C_in, Lp)
        acc = jnp.dot(w[0], xb[:, 0:L], preferred_element_type=jnp.float32)
        for k in range(1, K):
            acc += jnp.dot(w[k], xb[:, k:k + L],
                           preferred_element_type=jnp.float32)
        acc += b_ref[...]                                    # (2*C_out_p, 1) bcast
        mu = acc[:C_out_p]
        log_var = acc[C_out_p:]
        z = mu + jnp.exp(0.5 * log_var) * eps_ref[0]
        z_ref[0] = z.astype(z_ref.dtype)
        mu_ref[0] = mu.astype(mu_ref.dtype)
        lv_ref[0] = log_var.astype(lv_ref.dtype)
    else:
        # Batched path: (TB, 2*C_out_p, C_in) @ (TB, C_in, L) per tap.
        acc = jnp.zeros((TB, 2 * C_out_p, L), jnp.float32)
        for k in range(K):
            wk = jnp.broadcast_to(w[k], (TB,) + w[k].shape)
            acc += jnp.einsum('boc,bcl->bol', wk, x[:, :, k:k + L],
                              preferred_element_type=jnp.float32)
        acc += b_ref[...][None, :, :]
        mu = acc[:, :C_out_p, :]
        log_var = acc[:, C_out_p:, :]
        z = mu + jnp.exp(0.5 * log_var) * eps_ref[...]
        z_ref[...] = z.astype(z_ref.dtype)
        mu_ref[...] = mu.astype(mu_ref.dtype)
        lv_ref[...] = log_var.astype(lv_ref.dtype)


def _tpu_vmem_caps():
    """Returns (per-step block VMEM budget, scoped vmem limit) in bytes."""
    try:
        cap = int(pltpu.get_tpu_info().vmem_capacity_bytes)
    except Exception:
        cap = 64 << 20                      # conservative (v7x-sized) fallback
    budget = max(8 << 20, min(cap // 4, 48 << 20))   # v5e/v6e ~32 MiB, v7x ~16 MiB
    limit = max(32 << 20, min(cap // 2, 96 << 20))   # raise scoped limit on v6e/v5e
    return budget, limit


def _pick_batch_tile(B, C_in, C_out_p, L, Lp, budget_bytes, itemsize=4):
    """Largest divisor of B whose double-buffered f32 working set fits the VMEM
    budget, while keeping at least 2 grid steps so the parallel axis can shard
    across the two TensorCores on v7x (per-step overhead is only ~0.35 us)."""
    per_b = 2 * itemsize * (C_in * Lp + 4 * C_out_p * L)   # x + eps + 3 outs, x2 bufs
    divisors = [t for t in range(1, B + 1) if B % t == 0]
    tb_cap = max(1, B // 2) if B >= 2 else B
    fit = [t for t in divisors if t <= tb_cap and t * per_b <= budget_bytes]
    if fit:
        return max(fit)
    fit_any = [t for t in divisors if t * per_b <= budget_bytes]
    if fit_any:
        return max(fit_any)
    # TODO(synk): if even one batch element overflows VMEM, tile L with
    # (K-1)-element halo blocks instead of whole rows.
    return 1


def vae_conv_forward(x, weight, bias, eps):
    """x: (B, C_in, L) f32; weight: (2*C_out, C_in, K); bias: (2*C_out,);
    eps: (B, C_out, L) N(0,1) noise.  Returns (z, mu, log_var), each (B, C_out, L)."""
    B, C_in, L = x.shape
    C2, _, K = weight.shape
    C_out = C2 // 2
    assert K % 2 == 1, "VAE_Conv requires odd kernel_size"
    pad = K // 2
    Lp = L + 2 * pad

    # Sublane-align the latent channel count so the mu/log_var split and the
    # output stores stay unmasked; padding is sliced off after the kernel.
    C_out_p = _round_up(C_out, 8)
    if C_out_p != C_out:
        pc = C_out_p - C_out
        weight = jnp.concatenate(
            [weight[:C_out], jnp.zeros((pc, C_in, K), weight.dtype),
             weight[C_out:], jnp.zeros((pc, C_in, K), weight.dtype)], axis=0)
        bias = jnp.concatenate(
            [bias[:C_out], jnp.zeros((pc,), bias.dtype),
             bias[C_out:], jnp.zeros((pc,), bias.dtype)], axis=0)
        eps = jnp.pad(eps, ((0, 0), (0, pc), (0, 0)))
    C2p = 2 * C_out_p

    # Only wrapper-side data op on x: the reflect pad (single cheap pass).
    x_pad = jnp.pad(x, ((0, 0), (0, 0), (pad, pad)), mode="reflect")  # (B, C_in, Lp)
    # Parameter-sized (tiny) reshapes only.
    w_taps = jnp.transpose(weight, (2, 0, 1))                         # (K, C2p, C_in)
    b_col = bias.reshape(C2p, 1)

    budget, vmem_limit = _tpu_vmem_caps()
    TB = _pick_batch_tile(B, C_in, C_out_p, L, Lp, budget)
    n_steps = B // TB

    kernel = functools.partial(_vae_conv_kernel, C_out_p=C_out_p, K=K, L=L)
    out_sds = jax.ShapeDtypeStruct((B, C_out_p, L), x.dtype)
    out_spec = pl.BlockSpec((TB, C_out_p, L), lambda i: (i, 0, 0))

    z, mu, log_var = pl.pallas_call(
        kernel,
        out_shape=(out_sds, out_sds, out_sds),
        grid_spec=pltpu.PrefetchScalarGridSpec(
            num_scalar_prefetch=0,
            grid=(n_steps,),
            in_specs=[
                pl.BlockSpec((TB, C_in, Lp), lambda i: (i, 0, 0)),    # padded input
                pl.BlockSpec((K, C2p, C_in), lambda i: (0, 0, 0)),    # weight (resident)
                pl.BlockSpec((C2p, 1), lambda i: (0, 0)),             # bias (resident)
                pl.BlockSpec((TB, C_out_p, L), lambda i: (i, 0, 0)),  # noise
            ],
            out_specs=(out_spec, out_spec, out_spec),
        ),
        compiler_params=pltpu.CompilerParams(
            dimension_semantics=("parallel",),
            vmem_limit_bytes=vmem_limit,
        ),
    )(x_pad, w_taps, b_col, eps)

    if C_out_p != C_out:
        z, mu, log_var = z[:, :C_out], mu[:, :C_out], log_var[:, :C_out]
    return z, mu, log_var


def _reference(x, weight, bias, eps):
    pad = weight.shape[-1] // 2
    x_pad = jnp.pad(x, ((0, 0), (0, 0), (pad, pad)), mode="reflect")
    out = lax.conv_general_dilated(
        x_pad, weight, window_strides=(1,), padding="VALID",
        dimension_numbers=("NCH", "OIH", "NCH"),
    ) + bias[None, :, None]
    c_out = weight.shape[0] // 2
    mu, log_var = out[:, :c_out], out[:, c_out:]
    return mu + jnp.exp(0.5 * log_var) * eps, mu, log_var


if __name__ == "__main__":
    # Small shapes consistent with the module: Conv1d input (B, C_in, L).
    B, C_in, C_out, L, K = 2, 4, 8, 16, 3

    key = jax.random.PRNGKey(0)
    kx, kw, kb, ke = jax.random.split(key, 4)

    x = jax.random.normal(kx, (B, C_in, L), dtype=jnp.float32)
    # Deterministic synthetic parameters (shapes from nn.Conv1d(C_in, 2*C_out, K)).
    weight = 0.1 * jax.random.normal(kw, (2 * C_out, C_in, K), dtype=jnp.float32)
    bias = 0.1 * jax.random.normal(kb, (2 * C_out,), dtype=jnp.float32)
    # Explicit epsilon (reparameterize's randn_like), passed in for determinism.
    eps = jax.random.normal(ke, (B, C_out, L), dtype=jnp.float32)

    z, mu, log_var = vae_conv_forward(x, weight, bias, eps)
    jax.block_until_ready((z, mu, log_var))

    z_r, mu_r, lv_r = _reference(x, weight, bias, eps)
    assert jnp.allclose(z, z_r, atol=1e-4, rtol=1e-4)
    assert jnp.allclose(mu, mu_r, atol=1e-4, rtol=1e-4)
    assert jnp.allclose(log_var, lv_r, atol=1e-4, rtol=1e-4)

    print("KERNEL_OK")
</pallas_src>

<mosaic_0001>
module attributes {stable_mosaic.version = 11 : i64} {
  func.func @_vae_conv_kernel(%arg0: i32, %arg1: memref<1x4x18xf32, #tpu.memory_space<vmem>>, %arg2: memref<3x16x4xf32, #tpu.memory_space<vmem>>, %arg3: memref<16x1xf32, #tpu.memory_space<vmem>>, %arg4: memref<1x8x16xf32, #tpu.memory_space<vmem>>, %arg5: memref<1x8x16xf32, #tpu.memory_space<vmem>>, %arg6: memref<1x8x16xf32, #tpu.memory_space<vmem>>, %arg7: memref<1x8x16xf32, #tpu.memory_space<vmem>>) attributes {dimension_semantics = [#tpu.dimension_semantics<parallel>], iteration_bounds = array<i64: 2>, scalar_prefetch = 0 : i64, scratch_operands = 0 : i64, tpu.core_type = #tpu.core_type<tc>, window_params = [{transform_indices = @transform_0, window_bounds = array<i64: 1, 4, 18>}, {pipeline_mode = #tpu.pipeline_mode<synchronous>, transform_indices = @transform_1, window_bounds = array<i64: 3, 16, 4>}, {pipeline_mode = #tpu.pipeline_mode<synchronous>, transform_indices = @transform_2, window_bounds = array<i64: 16, 1>}, {transform_indices = @transform_3, window_bounds = array<i64: 1, 8, 16>}, {transform_indices = @transform_4, window_bounds = array<i64: 1, 8, 16>}, {transform_indices = @transform_5, window_bounds = array<i64: 1, 8, 16>}, {transform_indices = @transform_6, window_bounds = array<i64: 1, 8, 16>}]} {
    %c0 = arith.constant 0 : index
    %c0_0 = arith.constant 0 : index
    %c0_1 = arith.constant 0 : index
    %0 = vector.load %arg1[%c0, %c0_0, %c0_1] : memref<1x4x18xf32, #tpu.memory_space<vmem>>, vector<1x4x18xf32>
    %c0_2 = arith.constant 0 : index
    %c0_3 = arith.constant 0 : index
    %c0_4 = arith.constant 0 : index
    %1 = vector.load %arg2[%c0_2, %c0_3, %c0_4] : memref<3x16x4xf32, #tpu.memory_space<vmem>>, vector<3x16x4xf32>
    %2 = vector.shape_cast %0 : vector<1x4x18xf32> to vector<4x18xf32>
    %3 = vector.extract_strided_slice %1 {offsets = [0, 0, 0], sizes = [1, 16, 4], strides = [1, 1, 1]} : vector<3x16x4xf32> to vector<1x16x4xf32>
    %4 = vector.shape_cast %3 : vector<1x16x4xf32> to vector<16x4xf32>
    %5 = vector.extract_strided_slice %2 {offsets = [0, 0], sizes = [4, 16], strides = [1, 1]} : vector<4x18xf32> to vector<4x16xf32>
    %cst = arith.constant dense<0.000000e+00> : vector<16x16xf32>
    %6 = tpu.matmul %4, %5, %cst {dimension_numbers = #tpu.dot_dimension_numbers<[1], [0], [0], [1], [0, 0, 1, 1], [], []>} : vector<16x4xf32>, vector<4x16xf32>, vector<16x16xf32> -> vector<16x16xf32>
    %7 = vector.extract_strided_slice %1 {offsets = [1, 0, 0], sizes = [1, 16, 4], strides = [1, 1, 1]} : vector<3x16x4xf32> to vector<1x16x4xf32>
    %8 = vector.shape_cast %7 : vector<1x16x4xf32> to vector<16x4xf32>
    %9 = vector.extract_strided_slice %2 {offsets = [0, 1], sizes = [4, 16], strides = [1, 1]} : vector<4x18xf32> to vector<4x16xf32>
    %cst_5 = arith.constant dense<0.000000e+00> : vector<16x16xf32>
    %10 = tpu.matmul %8, %9, %cst_5 {dimension_numbers = #tpu.dot_dimension_numbers<[1], [0], [0], [1], [0, 0, 1, 1], [], []>} : vector<16x4xf32>, vector<4x16xf32>, vector<16x16xf32> -> vector<16x16xf32>
    %11 = arith.addf %6, %10 : vector<16x16xf32>
    %12 = vector.extract_strided_slice %1 {offsets = [2, 0, 0], sizes = [1, 16, 4], strides = [1, 1, 1]} : vector<3x16x4xf32> to vector<1x16x4xf32>
    %13 = vector.shape_cast %12 : vector<1x16x4xf32> to vector<16x4xf32>
    %14 = vector.extract_strided_slice %2 {offsets = [0, 2], sizes = [4, 16], strides = [1, 1]} : vector<4x18xf32> to vector<4x16xf32>
    %cst_6 = arith.constant dense<0.000000e+00> : vector<16x16xf32>
    %15 = tpu.matmul %13, %14, %cst_6 {dimension_numbers = #tpu.dot_dimension_numbers<[1], [0], [0], [1], [0, 0, 1, 1], [], []>} : vector<16x4xf32>, vector<4x16xf32>, vector<16x16xf32> -> vector<16x16xf32>
    %16 = arith.addf %11, %15 : vector<16x16xf32>
    %c0_7 = arith.constant 0 : index
    %c0_8 = arith.constant 0 : index
    %17 = vector.load %arg3[%c0_7, %c0_8] : memref<16x1xf32, #tpu.memory_space<vmem>>, vector<16x1xf32>
    %18 = vector.broadcast %17 : vector<16x1xf32> to vector<16x16xf32>
    %19 = arith.addf %16, %18 : vector<16x16xf32>
    %20 = vector.extract_strided_slice %19 {offsets = [0, 0], sizes = [8, 16], strides = [1, 1]} : vector<16x16xf32> to vector<8x16xf32>
    %21 = vector.extract_strided_slice %19 {offsets = [8, 0], sizes = [8, 16], strides = [1, 1]} : vector<16x16xf32> to vector<8x16xf32>
    %cst_9 = arith.constant 5.000000e-01 : f32
    %22 = vector.broadcast %cst_9 : f32 to vector<8x16xf32>
    %23 = arith.mulf %22, %21 : vector<8x16xf32>
    %24 = math.exp %23 : vector<8x16xf32>
    %c0_10 = arith.constant 0 : index
    %c0_11 = arith.constant 0 : index
    %c0_12 = arith.constant 0 : index
    %25 = vector.load %arg4[%c0_10, %c0_11, %c0_12] : memref<1x8x16xf32, #tpu.memory_space<vmem>>, vector<1x8x16xf32>
    %26 = vector.shape_cast %25 : vector<1x8x16xf32> to vector<8x16xf32>
    %27 = arith.mulf %24, %26 : vector<8x16xf32>
    %28 = arith.addf %20, %27 : vector<8x16xf32>
    %c0_13 = arith.constant 0 : index
    %c0_14 = arith.constant 0 : index
    %c0_15 = arith.constant 0 : index
    %29 = vector.load %arg5[%c0_13, %c0_14, %c0_15] : memref<1x8x16xf32, #tpu.memory_space<vmem>>, vector<1x8x16xf32>
    %30 = vector.shape_cast %29 : vector<1x8x16xf32> to vector<8x16xf32>
    %31 = vector.shape_cast %28 : vector<8x16xf32> to vector<1x8x16xf32>
    tpu.vector_store %arg5[%c0_13, %c0_14, %c0_15], %31 {strides = array<i32>} : memref<1x8x16xf32, #tpu.memory_space<vmem>>, vector<1x8x16xf32>,
    %c0_16 = arith.constant 0 : index
    %c0_17 = arith.constant 0 : index
    %c0_18 = arith.constant 0 : index
    %32 = vector.load %arg6[%c0_16, %c0_17, %c0_18] : memref<1x8x16xf32, #tpu.memory_space<vmem>>, vector<1x8x16xf32>
    %33 = vector.shape_cast %32 : vector<1x8x16xf32> to vector<8x16xf32>
    %34 = vector.shape_cast %20 : vector<8x16xf32> to vector<1x8x16xf32>
    tpu.vector_store %arg6[%c0_16, %c0_17, %c0_18], %34 {strides = array<i32>} : memref<1x8x16xf32, #tpu.memory_space<vmem>>, vector<1x8x16xf32>,
    %c0_19 = arith.constant 0 : index
    %c0_20 = arith.constant 0 : index
    %c0_21 = arith.constant 0 : index
    %35 = vector.load %arg7[%c0_19, %c0_20, %c0_21] : memref<1x8x16xf32, #tpu.memory_space<vmem>>, vector<1x8x16xf32>
    %36 = vector.shape_cast %35 : vector<1x8x16xf32> to vector<8x16xf32>
    %37 = vector.shape_cast %21 : vector<8x16xf32> to vector<1x8x16xf32>
    tpu.vector_store %arg7[%c0_19, %c0_20, %c0_21], %37 {strides = array<i32>} : memref<1x8x16xf32, #tpu.memory_space<vmem>>, vector<1x8x16xf32>,
    return
  }
  func.func @transform_0(%arg0: i32) -> (i32, i32, i32) {
    %c0_i32 = arith.constant 0 : i32
    %c0_i32_0 = arith.constant 0 : i32
    %c0_i32_1 = arith.constant 0 : i32
    return %arg0, %c0_i32, %c0_i32_0 : i32, i32, i32
  }
  func.func @transform_1(%arg0: i32) -> (i32, i32, i32) {
    %c0_i32 = arith.constant 0 : i32
    %c0_i32_0 = arith.constant 0 : i32
    %c0_i32_1 = arith.constant 0 : i32
    %c0_i32_2 = arith.constant 0 : i32
    return %c0_i32, %c0_i32_0, %c0_i32_1 : i32, i32, i32
  }
  func.func @transform_2(%arg0: i32) -> (i32, i32) {
    %c0_i32 = arith.constant 0 : i32
    %c0_i32_0 = arith.constant 0 : i32
    %c0_i32_1 = arith.constant 0 : i32
    return %c0_i32, %c0_i32_0 : i32, i32
  }
  func.func @transform_3(%arg0: i32) -> (i32, i32, i32) {
    %c0_i32 = arith.constant 0 : i32
    %c0_i32_0 = arith.constant 0 : i32
    %c0_i32_1 = arith.constant 0 : i32
    return %arg0, %c0_i32, %c0_i32_0 : i32, i32, i32
  }
  func.func @transform_4(%arg0: i32) -> (i32, i32, i32) {
    %c0_i32 = arith.constant 0 : i32
    %c0_i32_0 = arith.constant 0 : i32
    %c0_i32_1 = arith.constant 0 : i32
    return %arg0, %c0_i32, %c0_i32_0 : i32, i32, i32
  }
  func.func @transform_5(%arg0: i32) -> (i32, i32, i32) {
    %c0_i32 = arith.constant 0 : i32
    %c0_i32_0 = arith.constant 0 : i32
    %c0_i32_1 = arith.constant 0 : i32
    return %arg0, %c0_i32, %c0_i32_0 : i32, i32, i32
  }
  func.func @transform_6(%arg0: i32) -> (i32, i32, i32) {
    %c0_i32 = arith.constant 0 : i32
    %c0_i32_0 = arith.constant 0 : i32
    %c0_i32_1 = arith.constant 0 : i32
    return %arg0, %c0_i32, %c0_i32_0 : i32, i32, i32
  }
}

</mosaic_0001>

<bundles_post_ra>
// kernel: tpu_custom_call.1
= control target key start
LH: loop header
LB: loop body
LE: loop exit
PB: predicated region body
PF: predicated region fallthrough
CT: control target
= control target key end

     0   :  { %s1232_s0 = inlined_call_operand.vmem [shape: f32[2,4,18], index: 0, kind: input, shape index: {}]   ;;  %s1233_s1 = inlined_call_operand.vmem [shape: f32[3,16,4], index: 1, kind: input, shape index: {}]   ;;  %s1234_s2 = inlined_call_operand.vmem [shape: f32[16,1], index: 2, kind: input, shape index: {}]   ;;  %s1235_s3 = inlined_call_operand.vmem [shape: f32[2,8,16], index: 3, kind: input, shape index: {}]   ;;  %s1236_s4 = inlined_call_operand.hbm [shape: f32[2,8,16], index: 4, kind: output, shape index: {0}]   ;;  %s1237_s5 = inlined_call_operand.hbm [shape: f32[2,8,16], index: 5, kind: output, shape index: {1}]   ;;  %s1238_s6 = inlined_call_operand.hbm [shape: f32[2,8,16], index: 6, kind: output, shape index: {2}]  }
   0x1   :  { %1241 = sst [smem:[#allocation9_spill]] %s1232_s0 }
   0x2   :  { %12 = vsyncpa [#allocation3], 0 }
   0x3   :  { %14 = vsyncpa [#allocation3 + $0x1], 0 }
   0x4   :  { %15 = vsyncpa [#allocation5], 0 }
   0x5   :  { %17 = vsyncpa [#allocation5 + $0x1], 0  ;;  %s1018_s21 = smov 0   ;;  %s1020_s22 = smov 0  }
   0x6   :  { %s1022_s23 = smov 0   ;;  %s1024_s24 = smov 0  }
   0x7 LB: > { %s1039_s25 = sadd.s32 4294967295, %s975_s24   ;;  %s1239_s26 = sadd.s32 4294967294, %s975_s24   ;;  %s975_s24 = sphi %s1024_s24, %s1250_s24   ;;  %s971_s23 = sphi %s1022_s23, %s1249_s23   ;;  %s967_s22 = sphi %s1020_s22, %s1248_s22   ;;  %s963_s21 = sphi %s1018_s21, %s1247_s21  }
   0x8   : > { %s1043_s27 = sadd.s32 1, %s975_s24   ;;  %s124_s28 = sadd.s32 1, %s971_s23 }
   0x9   : > { %s121_s29 = ssub.s32 %s975_s24, %s1043_s27  ;;  %p134_p0 = scmp.ne.s32.totalorder %s971_s23, %s967_s22 }
   0xa   : > { %p122_p1 = scmp.eq.s32.totalorder %s121_s29, 0  ;;  %p135_p2 = scmp.eq.s32.totalorder %s1039_s25, 1 }
   0xb   : > { %p140_p3 = scmp.ne.s32.totalorder %s967_s22, %s963_s21  ;;  %p141_p4 = scmp.eq.s32.totalorder %s1239_s26, 1 }
   0xc   : > { %s1056_s30 = scalar_select %p122_p1, %s971_s23, %s124_s28  }
   0xd   : > { %p1058_p5 = por %p135_p2, %p134_p0  ;;  %p1062_p6 = por %p141_p4, %p140_p3 }
   0xe   : > { %p756_p7 = scmp.ge.s32.totalorder %s975_s24, 1  ;;  %p231_p8 = scmp.lt.s32.totalorder %s975_s24, 3 }
  0x10   : > { %p232_p9 = pnand %p756_p7, %p231_p8 }
  0x11   : > { %p274_p10 = scmp.lt.s32.totalorder (!%p232_p9), %s1039_s25, 1  ;;  %s1244_s0 = sld [smem:[#allocation9_spill]] (!%p232_p9) }
  0x12   : > { %235 = sbr.rel (%p232_p9) target bundleno = 412 (0x19c), region = 36  ;;  %s978_s10 = smov (!%p232_p9), 127  }
  0x13   : > { %s979_s11 = smov (!%p232_p9), 126   ;;  %s576_s28 = sand.u32 (!%p232_p9), 1, %s1039_s25  }
  0x14   : > { %s1119_s29 = sshll.u32 (!%p232_p9), %s1039_s25, 7  ;;  %s1144_s14 = scalar_lea.sflag (!%p232_p9), [#allocation5], %s576_s28 }
  0x15   : > { %s1138_s18 = scalar_lea.hbm (!%p232_p9), %s1238_s6, %s1119_s29  ;;  %s980_s26 = smov (!%p232_p9), [#allocation4]  }
  0x17   : > { %v285_v0 = vld [vmem:[%s1233_s1 + $0x10] sm:$0xff]  ;;  %vm292_vm0 = vcmask 31744   ;;  %v283_v1 = vld [vmem:[%s1233_s1] sm:$0xff]  ;;  %s1077_s13 = scalar_select %p274_p10, %s1039_s25, 1  ;;  %v977_v2 = vmov 0   ;;  %v548_v3 = vld [vmem:[%s1234_s2 + $0x8] sm:$0xff] }
  0x18   : > { %790 = vmatprep.mubr.msk.f32.mxu0 %vm292_vm0, %v285_v0  ;;  %795 = vmatprep.mubr.msk.f32.mxu1 %vm292_vm0, %v283_v1  ;;  %vm299_vm1 = vcmask 1043456   ;;  %v547_v4 = vld [vmem:[%s1234_s2] sm:$0xff]  ;;  %v284_v6 = vld [vmem:[%s1233_s1 + $0x8] sm:$0xff]  ;;  %v286_v8 = vld [vmem:[%s1233_s1 + $0x18] sm:$0xff]  ;;  %vm567_vm2 = vcmask 130048  }
  0x19   : > { %855 = vset.pattern.permute.xlu1 %v977_v2  ;;  %856 = vset.pattern.permute.xlu0 %v977_v2  ;;  %s760_s16 = sshll.u32 %s1077_s13, 2  ;;  %v287_v9 = vld [vmem:[%s1233_s1 + $0x20] sm:$0xff]  ;;  %v288_v11 = vld [vmem:[%s1233_s1 + $0x28] sm:$0xff] }
  0x1a   : > { %556 = vperm.xlu1 %855, %v548_v3   ;;  %s277_s19 = scalar_lea.vmem %s1244_s0, %s760_s16  ;;  %s1129_s16 = scalar_lea.hbm %s1237_s5, %s1119_s29 }
  0x1b   : > { %v282_v5 = vld [vmem:[%s277_s19] sm:$0xf]  ;;  %s1240_s19 = sand.u32 1, %s967_s22  }
  0x1c   : > { %290 = vrot.lane.b32.xlu0 %v282_v5, %s978_s10  ;;  %793 = vmatprep.subr.msk.mxu1 %vm299_vm1, %v282_v5  ;;  %s1115_s20 = sshll.u32 %s1240_s19, 3 }
  0x1d   : > { %794 = vmatpush3.msk.msra.mxu1 %vm299_vm1, %v282_v5  ;;  %s266_s9 = scalar_lea.vmem [#allocation4], %s1115_s20 }
  0x1e   : > { %551 = vperm.xlu1 %855, %v547_v4   ;;  %796 = vmatmul.mubr.msk.f32.vlgmr.msra.gmra.mxu1 %vm292_vm0, %v284_v6  ;;  %s608_s10 = sshll.u32 %s266_s9, 4  ;;  %s1131_s10 = int_to_ptr.vmem [resolvable:$true] %s608_s10 }
  0x1f   : > { %s859_s15 = scalar_lea.vmem %s1131_s10, 128 }
  0x20   : > { %460 = vrot.lane.b32.xlu0 %v282_v5, %s979_s11  ;;  %s273_s11 = scalar_lea.vmem [#allocation6], %s1115_s20  ;;  %p860_p11 = scmp.ne.s32.totalorder %s1131_s10, %s859_s15 }
  0x21   : > { %s621_s12 = sshll.u32 %s273_s11, 4  ;;  %s1140_s12 = int_to_ptr.vmem [resolvable:$true] %s621_s12 }
  0x22   : > { %p861_p12 = pnand %p860_p11, %p1058_p5 }
  0x24   : > { %p862_p13 = pneg %p861_p12 }
  0x8e   : > { %v291_v7 = vpop.permute.xlu0 %290 }
  0x8f   : > { %788 = vmatprep.subr.msk.mxu0 %vm299_vm1, %v291_v7 }
  0x90   : > { %789 = vmatpush3.msk.msra.mxu0 %vm299_vm1, %v291_v7 }
  0x91   : > { %791 = vmatmul.mubr.msk.f32.vlgmr.msra.gmra.mxu0 %vm292_vm0, %v286_v8 }
  0x92   : > { %v461_v10 = vpop.permute.xlu0 %460  ;;  %800 = vmatprep.mubr.msk.f32.mxu0 %vm292_vm0, %v287_v9 }
  0x93   : > { %798 = vmatprep.subr.msk.mxu0 %vm299_vm1, %v461_v10 }
  0x94   : > { %799 = vmatpush3.msk.msra.mxu0 %vm299_vm1, %v461_v10 }
  0x95   : > { %801 = vmatmul.mubr.msk.f32.vlgmr.msra.gmra.mxu0 %vm292_vm0, %v288_v11  ;;  %v557_v14 = vpop.permute.xlu1 %556 }
  0x99   : > { %v552_v24 = vpop.permute.xlu1 %551 }
  0xde   : > { %v797_v12 = vpop.f32.mrf.mxu1 }
  0xe0   : > { %v451_v16 = vpop.f32.mrf.mxu1 }
 0x151   : > { %v792_v13 = vpop.f32.mrf.mxu0 }
 0x152   : > { %v457_v17 = vadd.f32 %v797_v12, %v792_v13 }
 0x153   : > { %v368_v15 = vpop.f32.mrf.mxu0 }
 0x154   : > { %v452_v19 = vadd.f32 %v451_v16, %v368_v15 }
 0x155   : > { %v802_v18 = vpop.f32.mrf.mxu0 }
 0x156   : > { %v546_v20 = vadd.f32 %v802_v18, %v457_v17 }
 0x157   : > { %v536_v21 = vpop.f32.mrf.mxu0 }
 0x158   : > { %v560_v22 = vadd.f32 %v557_v14, %v546_v20  ;;  %v545_v23 = vadd.f32 %v536_v21, %v452_v19 }
 0x15a   : > { %v561_v25 = vmul.f32 0.5, %v560_v22  ;;  %v1123_v26 = vadd.f32 %v552_v24, %v545_v23  ;;  %570 = vst.msk [vmem:[%s273_s11] sm:$0xff] %vm567_vm2, %v560_v22  ;;  %s863_s11 = sshll.u32 %s980_s26, 4  ;;  %s864_s11 = int_to_ptr.vmem [resolvable:$false] %s863_s11 }
 0x15b   : > { %s865_s19 = scalar_lea.vmem %s864_s11, 256  ;;  %p866_p0 = scmp.lt.s32.totalorder %s1131_s10, %s864_s11 }
 0x15c   : > { %v562_v27 = vmul.f32 1.442695, %v561_v25  ;;  %569 = vst.msk [vmem:[%s266_s9] sm:$0xff] %vm567_vm2, %v1123_v26  ;;  %p867_p1 = scmp.lt.s32.totalorder %s865_s19, %s859_s15 }
 0x15e   : > { %p868_p2 = por %p867_p1, %p866_p0 }
 0x160   : > { %p869_p3 = pnand %p868_p2, %p862_p13 }
 0x162   : > { %872 = shalt.err (!%p869_p3)
}
 0x163   : > { %s873_s28 = scalar_lea.hbm %s1129_s16, 128  ;;  %s877_s26 = scalar_lea.hbm %s1237_s5, 256 }
 0x164   : > { %p874_p4 = scmp.ne.s32.totalorder %s1129_s16, %s873_s28  ;;  %p878_p9 = scmp.lt.s32.totalorder %s1129_s16, %s1237_s5 }
 0x165   : > { %p879_p10 = scmp.lt.s32.totalorder %s877_s26, %s873_s28 }
 0x166   : > { %p875_p7 = pnand %p874_p4, %p1058_p5 }
 0x167   : > { %p880_p11 = por %p879_p10, %p878_p9 }
 0x168   : > { %p876_p8 = pneg %p875_p7 }
 0x16a   : > { %p881_p12 = pnand %p880_p11, %p876_p8 }
 0x16c   : > { %884 = shalt.err (!%p881_p12)
}
 0x16d   : > { %804 = dma.vmem_to_hbm [thread:$0]  (%p1058_p5), %s1131_s10, 128, %s1129_s16, %s1144_s14   ;;  %857 = vpow2.f32 %v562_v27 }
 0x16e   : > { %s885_s19 = scalar_lea.vmem %s1140_s12, 128  ;;  %s981_s0 = smov [#allocation6]  }
 0x16f   : > { %p886_p13 = scmp.ne.s32.totalorder %s1140_s12, %s885_s19  ;;  %s889_s15 = sshll.u32 %s981_s0, 4  ;;  %s890_s15 = int_to_ptr.vmem [resolvable:$false] %s889_s15 }
 0x170   : > { %s891_s11 = scalar_lea.vmem %s890_s15, 256  ;;  %p892_p2 = scmp.lt.s32.totalorder %s1140_s12, %s890_s15 }
 0x171   : > { %p887_p0 = pnand %p886_p13, %p1058_p5  ;;  %p893_p3 = scmp.lt.s32.totalorder %s891_s11, %s885_s19 }
 0x173   : > { %p888_p1 = pneg %p887_p0  ;;  %p894_p4 = por %p893_p3, %p892_p2 }
 0x175   : > { %p895_p7 = pnand %p894_p4, %p888_p1 }
 0x177   : > { %898 = shalt.err (!%p895_p7)
}
 0x178   : > { %s899_s10 = scalar_lea.hbm %s1138_s18, 128  ;;  %s903_s9 = scalar_lea.hbm %s1238_s6, 256 }
 0x179   : > { %p900_p8 = scmp.ne.s32.totalorder %s1138_s18, %s899_s10  ;;  %p904_p11 = scmp.lt.s32.totalorder %s1138_s18, %s1238_s6 }
 0x17a   : > { %p905_p12 = scmp.lt.s32.totalorder %s903_s9, %s899_s10 }
 0x17b   : > { %p901_p9 = pnand %p900_p8, %p1058_p5 }
 0x17c   : > { %p906_p13 = por %p905_p12, %p904_p11 }
 0x17d   : > { %p902_p10 = pneg %p901_p9 }
 0x17f   : > { %p907_p0 = pnand %p906_p13, %p902_p10 }
 0x181   : > { %910 = shalt.err (!%p907_p0)
}
 0x182   : > { %805 = dma.vmem_to_hbm [thread:$0]  (%p1058_p5), %s1140_s12, 128, %s1138_s18, %s1144_s14   ;;  %v858_v29 = vpop.eup %857 }
 0x183   : > { %s761_s17 = sshll.u32 %s1077_s13, 3  ;;  %s259_s11 = scalar_lea.vmem [#allocation2], %s1115_s20 }
 0x184   : > { %s281_s15 = scalar_lea.vmem %s1235_s3, %s761_s17  ;;  %s595_s10 = sshll.u32 %s259_s11, 4  ;;  %s596_s10 = int_to_ptr.vmem [resolvable:$true] %s595_s10 }
 0x185   : > { %v564_v28 = vld [vmem:[%s281_s15] sm:$0xff]  ;;  %s593_s9 = scalar_lea.hbm %s1236_s4, %s1119_s29  ;;  %s1245_s12 = sand.u32 1, %s967_s22  }
 0x186   : > { %v565_v30 = vmul.f32 %v858_v29, %v564_v28  ;;  %s572_s13 = scalar_lea.sflag [#allocation3], %s1245_s12  ;;  %s911_s18 = scalar_lea.vmem %s596_s10, 128 }
 0x187   : > { %p912_p1 = scmp.ne.s32.totalorder %s596_s10, %s911_s18  ;;  %s982_s14 = smov [#allocation2]  }
 0x188   : > { %v566_v31 = vadd.f32 %v565_v30, %v1123_v26  ;;  %s915_s20 = sshll.u32 %s982_s14, 4  ;;  %s916_s20 = int_to_ptr.vmem [resolvable:$false] %s915_s20 }
 0x189   : > { %p913_p2 = pnand %p912_p1, %p1058_p5  ;;  %s917_s25 = scalar_lea.vmem %s916_s20, 256 }
 0x18a   : > { %568 = vst.msk [vmem:[%s259_s11] sm:$0xff] %vm567_vm2, %v566_v31  ;;  %p918_p4 = scmp.lt.s32.totalorder %s596_s10, %s916_s20  ;;  %p919_p7 = scmp.lt.s32.totalorder %s917_s25, %s911_s18 }
 0x18b   : > { %p914_p3 = pneg %p913_p2 }
 0x18c   : > { %p920_p8 = por %p919_p7, %p918_p4 }
 0x18e   : > { %p921_p9 = pnand %p920_p8, %p914_p3 }
 0x190   : > { %924 = shalt.err (!%p921_p9)
}
 0x191   : > { %s925_s29 = scalar_lea.hbm %s593_s9, 128  ;;  %s929_s19 = scalar_lea.hbm %s1236_s4, 256 }
 0x192   : > { %p926_p10 = scmp.ne.s32.totalorder %s593_s9, %s925_s29  ;;  %p930_p13 = scmp.lt.s32.totalorder %s593_s9, %s1236_s4 }
 0x193   : > { %p931_p0 = scmp.lt.s32.totalorder %s929_s19, %s925_s29 }
 0x194   : > { %p927_p11 = pnand %p926_p10, %p1058_p5 }
 0x195   : > { %p932_p1 = por %p931_p0, %p930_p13 }
 0x196   : > { %p928_p12 = pneg %p927_p11 }
 0x198   : > { %p933_p2 = pnand %p932_p1, %p928_p12 }
 0x19a   : > { %936 = shalt.err (!%p933_p2)
}
 0x19b   : > { %803 = dma.vmem_to_hbm [thread:$0]  (%p1058_p5), %s596_s10, 128, %s593_s9, %s572_s13  }
 0x19c PF: > { %p819_p3 = scmp.ge.s32.totalorder %s975_s24, 2  ;;  %s633_s11 = sand.u32 1, %s963_s21  }
 0x19d   : > { %s634_s16 = scalar_lea.sflag [#allocation3], %s633_s11 }
 0x19e   : > { %p810_p4 = pnand %p819_p3, %p1062_p6 }
 0x1a0   : > { %p811_p7 = pneg %p810_p4 }
 0x1a2   : > { %954 = dma.done.wait (%p811_p7), %s634_s16, 128  }
 0x1a3   : > { %956 = vsyncadd (%p811_p7), %s634_s16, 4294967168  ;;  %s1246_s28 = sadd.s32 4294967294, %s975_s24  }
 0x1a4   : > { %s642_s12 = sand.u32 1, %s1246_s28  }
 0x1a5   : > { %s643_s18 = scalar_lea.sflag [#allocation5], %s642_s12 }
 0x1a6   : > { %958 = dma.done.wait (%p811_p7), %s643_s18, 256  }
 0x1a7   : > { %960 = vsyncadd (%p811_p7), %s643_s18, 4294967040  ;;  %p20_p5 = scmp.ge.s32.totalorder %s1043_s27, 4   ;;  %s1247_s21 = smov %s967_s22 }
 0x1a8   : > { %s1248_s22 = smov %s971_s23  ;;  %s1249_s23 = smov %s1056_s30 }
 0x1a9   : > { %s1250_s24 = smov %s1043_s27  ;;  %22 = sbr.rel (!%p20_p5) target bundleno = 7 (0x7), region = 106 }
 0x1ae   :  { %657 = vsyncpa [#allocation3], 1 }
 0x1af   :  { %659 = vsyncpa [#allocation3 + $0x1], 1 }
 0x1b0   :  { %660 = vsyncpa [#allocation5], 1 }
 0x1b1   :  { %662 = vsyncpa [#allocation5 + $0x1], 1 }

</bundles_post_ra>
